<compile_context>
chip_gen: v6e
topology: v6e:2x2x1
jax: 0.10.0
libtpu: 0.0.40
codegen_flags: <defaults>
</compile_context>

<pallas_src>
import jax
import jax.numpy as jnp
from jax import lax
from jax.experimental import pallas as pl
from jax.experimental.pallas import tpu as pltpu


def _mlp_kernel(x_ref, w1_ref, b1_ref, w2_ref, b2_ref, w3_ref, b3_ref, o_ref):
    x = x_ref[...]                                      # (T, 8), native HBM layout

    # linear1 + Softsign.  The matmul also reorients the batch onto lanes:
    #   (6, 8) contracted with (T, 8) on the trailing dim of both -> (6, T).
    h1 = lax.dot_general(
        w1_ref[...], x,
        dimension_numbers=(((1,), (1,)), ((), ())),
        preferred_element_type=jnp.float32,
    ) + b1_ref[...]
    h1 = h1 * pl.reciprocal(1.0 + jnp.abs(h1), approx=True)     # EUP, not VALU divide

    # linear2 + Softsign:  (4, 6) @ (6, T) -> (4, T)
    h2 = jnp.dot(w2_ref[...], h1, preferred_element_type=jnp.float32) + b2_ref[...]
    h2 = h2 * pl.reciprocal(1.0 + jnp.abs(h2), approx=True)

    # linear3 + Sigmoid:   (1, 4) @ (4, T) -> (1, T), lane-dense output row
    h3 = jnp.dot(w3_ref[...], h2, preferred_element_type=jnp.float32) + b3_ref[...]
    o_ref[...] = jax.nn.sigmoid(h3).astype(o_ref.dtype)


# Conservative live-VMEM budget per batch row (f32), for this kernel variant:
#   2 x (T, 8) input buffers lane-padded to (T, 128)      -> 1024 B/row
#   2 x (1, T) output buffers sublane-padded to (8, T)    ->   64 B/row
#   kernel-internal values (x, transposed copy, h1..h3)   -> ~700 B/row
_BYTES_PER_ROW = 2048
_ABS_MAX_TILE = 32768      # past ~1-2 MiB real traffic/step, returns diminish


def _vmem_capacity_bytes():
    try:
        return int(pltpu.get_tpu_info().vmem_capacity_bytes)
    except Exception:
        return 64 << 20    # conservative default (v7x-sized VMEM)


def _choose_batch_tile(B, vmem_capacity):
    """VMEM-aware batch tile; >= 2 grid steps for non-tiny batches (dual-TC v7x)."""
    cap = (int(vmem_capacity * 0.5) // _BYTES_PER_ROW // 128) * 128
    cap = max(128, min(_ABS_MAX_TILE, cap))
    if B < 256:
        return B                                        # one step, block == full batch
    half = ((-(-B // 2)) + 127) // 128 * 128            # ~ceil(B/2), lane aligned
    return min(cap, half)


def linear_model_forward(x, params, *, batch_tile=None):
    """Fused 3-layer MLP forward.  x: (B, 8) float32 -> (B, 1) float32."""
    w1, b1, w2, b2, w3, b3 = params
    B = x.shape[0]

    vmem_cap = _vmem_capacity_bytes()
    if batch_tile is None:
        batch_tile = _choose_batch_tile(B, vmem_cap)

    # Pad the batch up to a tile multiple; the tail rows are sliced off below.
    Bp = -(-B // batch_tile) * batch_tile
    if Bp != B:
        x = jnp.pad(x, ((0, Bp - B), (0, 0)))
    grid = Bp // batch_tile

    # Derive the VMEM limit from the actual buffer budget (never the full
    # physical VMEM): 3/4 of capacity at most, 2x the estimated need at least.
    need = batch_tile * _BYTES_PER_ROW + (1 << 20)
    vmem_limit = int(min(vmem_cap * 3 // 4, max(2 * need, 32 << 20)))

    const = lambda arr: pl.BlockSpec(arr.shape, lambda i: (0, 0))   # resident constants

    out_row = pl.pallas_call(
        _mlp_kernel,
        out_shape=jax.ShapeDtypeStruct((1, Bp), jnp.float32),
        grid_spec=pltpu.PrefetchScalarGridSpec(
            num_scalar_prefetch=0,
            grid=(grid,),
            in_specs=[
                pl.BlockSpec((batch_tile, 8), lambda i: (i, 0)),    # native-layout x tile
                const(w1), const(b1),                               # layer 1
                const(w2), const(b2),                               # layer 2
                const(w3), const(b3),                               # layer 3
            ],
            out_specs=pl.BlockSpec((1, batch_tile), lambda i: (0, i)),  # lane-dense row
        ),
        compiler_params=pltpu.CompilerParams(
            dimension_semantics=("parallel",),   # >= 2 steps => both v7x TCs busy
            vmem_limit_bytes=vmem_limit,
        ),
        cost_estimate=pl.CostEstimate(
            flops=152 * Bp,             # 2*(8*6 + 6*4 + 4*1) per row
            transcendentals=3 * Bp,     # 2 softsign reciprocals + 1 sigmoid per row
            bytes_accessed=36 * Bp,     # 32 B in + 4 B out per row
        ),
    )(x, w1, b1, w2, b2, w3, b3)

    # (1, Bp) -> (B, 1): order-preserving reshape + tail slice (no transpose pass).
    return out_row.reshape(Bp, 1)[:B]


def init_params(key):
    """Deterministic params in native torch.nn.Linear layout.

    W: (out_features, in_features), b: (out_features, 1); init mimics torch's
    U(-1/sqrt(in), 1/sqrt(in)).
    """
    dims = [(8, 6), (6, 4), (4, 1)]
    keys = jax.random.split(key, 2 * len(dims))
    params = []
    for li, (fin, fout) in enumerate(dims):
        bound = 1.0 / jnp.sqrt(jnp.float32(fin))
        w = jax.random.uniform(keys[2 * li], (fout, fin), jnp.float32, -bound, bound)
        b = jax.random.uniform(keys[2 * li + 1], (fout, 1), jnp.float32, -bound, bound)
        params += [w, b]
    return tuple(params)


def reference_forward(x, params):
    w1, b1, w2, b2, w3, b3 = params
    softsign = lambda v: v / (1.0 + jnp.abs(v))
    h = softsign(x @ w1.T + b1.T)
    h = softsign(h @ w2.T + b2.T)
    return jax.nn.sigmoid(h @ w3.T + b3.T)


if __name__ == "__main__":
    key = jax.random.PRNGKey(0)
    pkey, xkey = jax.random.split(key)
    params = init_params(pkey)

    # Small batch consistent with the module's 8-feature input.
    x = jax.random.normal(xkey, (16, 8), dtype=jnp.float32)

    out = linear_model_forward(x, params)
    out = jax.block_until_ready(out)

    ref = reference_forward(x, params)
    assert out.shape == (16, 1)
    # approx-reciprocal Softsign perturbs low-order bits -> slightly relaxed tol.
    assert jnp.allclose(out, ref, atol=2e-3, rtol=2e-3), "mismatch vs reference"

    print("KERNEL_OK")
</pallas_src>

<mosaic_0001>
module attributes {stable_mosaic.version = 11 : i64} {
  func.func @_mlp_kernel(%arg0: i32, %arg1: memref<16x8xf32, #tpu.memory_space<vmem>>, %arg2: memref<6x8xf32, #tpu.memory_space<vmem>>, %arg3: memref<6x1xf32, #tpu.memory_space<vmem>>, %arg4: memref<4x6xf32, #tpu.memory_space<vmem>>, %arg5: memref<4x1xf32, #tpu.memory_space<vmem>>, %arg6: memref<1x4xf32, #tpu.memory_space<vmem>>, %arg7: memref<1x1xf32, #tpu.memory_space<vmem>>, %arg8: memref<1x16xf32, #tpu.memory_space<vmem>>) attributes {dimension_semantics = [#tpu.dimension_semantics<parallel>], iteration_bounds = array<i64: 1>, scalar_prefetch = 0 : i64, scratch_operands = 0 : i64, tpu.core_type = #tpu.core_type<tc>, window_params = [{transform_indices = @transform_0, window_bounds = array<i64: 16, 8>}, {pipeline_mode = #tpu.pipeline_mode<synchronous>, transform_indices = @transform_1, window_bounds = array<i64: 6, 8>}, {pipeline_mode = #tpu.pipeline_mode<synchronous>, transform_indices = @transform_2, window_bounds = array<i64: 6, 1>}, {pipeline_mode = #tpu.pipeline_mode<synchronous>, transform_indices = @transform_3, window_bounds = array<i64: 4, 6>}, {pipeline_mode = #tpu.pipeline_mode<synchronous>, transform_indices = @transform_4, window_bounds = array<i64: 4, 1>}, {pipeline_mode = #tpu.pipeline_mode<synchronous>, transform_indices = @transform_5, window_bounds = array<i64: 1, 4>}, {pipeline_mode = #tpu.pipeline_mode<synchronous>, transform_indices = @transform_6, window_bounds = array<i64: 1, 1>}, {transform_indices = @transform_7, window_bounds = array<i64: 1, 16>}]} {
    %c0 = arith.constant 0 : index
    %c0_0 = arith.constant 0 : index
    %0 = vector.load %arg1[%c0, %c0_0] : memref<16x8xf32, #tpu.memory_space<vmem>>, vector<16x8xf32>
    %c0_1 = arith.constant 0 : index
    %c0_2 = arith.constant 0 : index
    %1 = vector.load %arg2[%c0_1, %c0_2] : memref<6x8xf32, #tpu.memory_space<vmem>>, vector<6x8xf32>
    %cst = arith.constant dense<0.000000e+00> : vector<6x16xf32>
    %2 = tpu.matmul %1, %0, %cst {dimension_numbers = #tpu.dot_dimension_numbers<[1], [1], [0], [0], [0, 0, 1, 0], [], []>} : vector<6x8xf32>, vector<16x8xf32>, vector<6x16xf32> -> vector<6x16xf32>
    %c0_3 = arith.constant 0 : index
    %c0_4 = arith.constant 0 : index
    %3 = vector.load %arg3[%c0_3, %c0_4] : memref<6x1xf32, #tpu.memory_space<vmem>>, vector<6x1xf32>
    %4 = vector.broadcast %3 : vector<6x1xf32> to vector<6x16xf32>
    %5 = arith.addf %2, %4 : vector<6x16xf32>
    %6 = math.absf %5 : vector<6x16xf32>
    %cst_5 = arith.constant 1.000000e+00 : f32
    %7 = vector.broadcast %cst_5 : f32 to vector<6x16xf32>
    %8 = arith.addf %7, %6 : vector<6x16xf32>
    %9 = tpu.reciprocal %8 {approx = true} : vector<6x16xf32> -> vector<6x16xf32>
    %10 = arith.mulf %5, %9 : vector<6x16xf32>
    %c0_6 = arith.constant 0 : index
    %c0_7 = arith.constant 0 : index
    %11 = vector.load %arg4[%c0_6, %c0_7] : memref<4x6xf32, #tpu.memory_space<vmem>>, vector<4x6xf32>
    %cst_8 = arith.constant dense<0.000000e+00> : vector<4x16xf32>
    %12 = tpu.matmul %11, %10, %cst_8 {dimension_numbers = #tpu.dot_dimension_numbers<[1], [0], [0], [1], [0, 0, 1, 1], [], []>} : vector<4x6xf32>, vector<6x16xf32>, vector<4x16xf32> -> vector<4x16xf32>
    %c0_9 = arith.constant 0 : index
    %c0_10 = arith.constant 0 : index
    %13 = vector.load %arg5[%c0_9, %c0_10] : memref<4x1xf32, #tpu.memory_space<vmem>>, vector<4x1xf32>
    %14 = vector.broadcast %13 : vector<4x1xf32> to vector<4x16xf32>
    %15 = arith.addf %12, %14 : vector<4x16xf32>
    %16 = math.absf %15 : vector<4x16xf32>
    %cst_11 = arith.constant 1.000000e+00 : f32
    %17 = vector.broadcast %cst_11 : f32 to vector<4x16xf32>
    %18 = arith.addf %17, %16 : vector<4x16xf32>
    %19 = tpu.reciprocal %18 {approx = true} : vector<4x16xf32> -> vector<4x16xf32>
    %20 = arith.mulf %15, %19 : vector<4x16xf32>
    %c0_12 = arith.constant 0 : index
    %c0_13 = arith.constant 0 : index
    %21 = vector.load %arg6[%c0_12, %c0_13] : memref<1x4xf32, #tpu.memory_space<vmem>>, vector<1x4xf32>
    %cst_14 = arith.constant dense<0.000000e+00> : vector<1x16xf32>
    %22 = tpu.matmul %21, %20, %cst_14 {dimension_numbers = #tpu.dot_dimension_numbers<[1], [0], [0], [1], [0, 0, 1, 1], [], []>} : vector<1x4xf32>, vector<4x16xf32>, vector<1x16xf32> -> vector<1x16xf32>
    %c0_15 = arith.constant 0 : index
    %c0_16 = arith.constant 0 : index
    %23 = vector.load %arg7[%c0_15, %c0_16] : memref<1x1xf32, #tpu.memory_space<vmem>>, vector<1x1xf32>
    %24 = vector.broadcast %23 : vector<1x1xf32> to vector<1x16xf32>
    %25 = arith.addf %22, %24 : vector<1x16xf32>
    %26 = arith.negf %25 : vector<1x16xf32>
    %27 = math.exp %26 : vector<1x16xf32>
    %cst_17 = arith.constant 1.000000e+00 : f32
    %28 = vector.broadcast %cst_17 : f32 to vector<1x16xf32>
    %29 = arith.addf %28, %27 : vector<1x16xf32>
    %30 = arith.divf %28, %29 : vector<1x16xf32>
    %c0_18 = arith.constant 0 : index
    %c0_19 = arith.constant 0 : index
    %31 = vector.load %arg8[%c0_18, %c0_19] : memref<1x16xf32, #tpu.memory_space<vmem>>, vector<1x16xf32>
    tpu.vector_store %arg8[%c0_18, %c0_19], %30 {strides = array<i32>} : memref<1x16xf32, #tpu.memory_space<vmem>>, vector<1x16xf32>,
    return
  }
  func.func @transform_0(%arg0: i32) -> (i32, i32) {
    %c0_i32 = arith.constant 0 : i32
    %c0_i32_0 = arith.constant 0 : i32
    return %arg0, %c0_i32 : i32, i32
  }
  func.func @transform_1(%arg0: i32) -> (i32, i32) {
    %c0_i32 = arith.constant 0 : i32
    %c0_i32_0 = arith.constant 0 : i32
    %c0_i32_1 = arith.constant 0 : i32
    return %c0_i32, %c0_i32_0 : i32, i32
  }
  func.func @transform_2(%arg0: i32) -> (i32, i32) {
    %c0_i32 = arith.constant 0 : i32
    %c0_i32_0 = arith.constant 0 : i32
    %c0_i32_1 = arith.constant 0 : i32
    return %c0_i32, %c0_i32_0 : i32, i32
  }
  func.func @transform_3(%arg0: i32) -> (i32, i32) {
    %c0_i32 = arith.constant 0 : i32
    %c0_i32_0 = arith.constant 0 : i32
    %c0_i32_1 = arith.constant 0 : i32
    return %c0_i32, %c0_i32_0 : i32, i32
  }
  func.func @transform_4(%arg0: i32) -> (i32, i32) {
    %c0_i32 = arith.constant 0 : i32
    %c0_i32_0 = arith.constant 0 : i32
    %c0_i32_1 = arith.constant 0 : i32
    return %c0_i32, %c0_i32_0 : i32, i32
  }
  func.func @transform_5(%arg0: i32) -> (i32, i32) {
    %c0_i32 = arith.constant 0 : i32
    %c0_i32_0 = arith.constant 0 : i32
    %c0_i32_1 = arith.constant 0 : i32
    return %c0_i32, %c0_i32_0 : i32, i32
  }
  func.func @transform_6(%arg0: i32) -> (i32, i32) {
    %c0_i32 = arith.constant 0 : i32
    %c0_i32_0 = arith.constant 0 : i32
    %c0_i32_1 = arith.constant 0 : i32
    return %c0_i32, %c0_i32_0 : i32, i32
  }
  func.func @transform_7(%arg0: i32) -> (i32, i32) {
    %c0_i32 = arith.constant 0 : i32
    %c0_i32_0 = arith.constant 0 : i32
    return %c0_i32, %arg0 : i32, i32
  }
}

</mosaic_0001>

<bundles_post_ra>
// kernel: tpu_custom_call.1
= control target key start
LH: loop header
LB: loop body
LE: loop exit
PB: predicated region body
PF: predicated region fallthrough
CT: control target
= control target key end

     0   :  { %s467_s0 = inlined_call_operand.vmem [shape: f32[16,8], index: 0, kind: input, shape index: {}]   ;;  %s468_s1 = inlined_call_operand.vmem [shape: f32[6,8], index: 1, kind: input, shape index: {}]   ;;  %s469_s2 = inlined_call_operand.vmem [shape: f32[6,1], index: 2, kind: input, shape index: {}]   ;;  %s470_s3 = inlined_call_operand.vmem [shape: f32[4,6], index: 3, kind: input, shape index: {}]   ;;  %s471_s4 = inlined_call_operand.vmem [shape: f32[4,1], index: 4, kind: input, shape index: {}]   ;;  %s472_s5 = inlined_call_operand.vmem [shape: f32[1,4], index: 5, kind: input, shape index: {}]   ;;  %s473_s6 = inlined_call_operand.<no memory space> [shape: f32[1,1], index: 6, kind: input, shape index: {}]   ;;  %s474_s7 = inlined_call_operand.hbm [shape: f32[1,16], index: 7, kind: output, shape index: {}]  }
   0x1   :  { %v12_v0 = vstv %s473_s6 }
   0x2   :  { %13 = vst [vmem:[#allocation2] sm:$0x1] %v12_v0 }
   0x3   :  { %v30_v1 = vld [vmem:[%s467_s0 + $0x8] sm:$0xff]  ;;  %vm38_vm0 = vcmask 64512   ;;  %v390_v2 = vmov 0.0   ;;  %vm391_vm1 = vmmov 0   ;;  %v32_v3 = vld [vmem:[%s469_s2] sm:$0x3f] }
   0x4   :  { %337 = vmatprep.subr.mxu0 %v390_v2  ;;  %341 = vmatprep.mubr.msk.f32.mxu0 %vm391_vm1, %v390_v2  ;;  %v392_v4 = vmov 0  }
   0x5   :  { %338 = vmatpush3.xpose.msk.msra.mxu0 %vm38_vm0, %v30_v1  ;;  %358 = vset.pattern.permute.xlu0 %v392_v4 }
   0x6   :  { %14 = vsyncpa [#allocation4], 0  ;;  %339 = vmatprep.subr.mxu0 %v390_v2  ;;  %v29_v5 = vld [vmem:[%s467_s0] sm:$0xff]  ;;  %35 = vperm.xlu0 %358, %v32_v3   ;;  %vm133_vm2 = vcmask 1045504   ;;  %vm129_vm3 = vcmask 48128   ;;  %vm226_vm4 = vcmask 1043456   ;;  %v218_v27 = vlaneseq }
   0x7   :  { %v123_v6 = vld [vmem:[%s471_s4] sm:$0xf]  ;;  %344 = vmatprep.subr.mxu1 %v390_v2  ;;  %346 = vmatprep.mubr.msk.f32.mxu1 %vm391_vm1, %v390_v2  ;;  %vm222_vm5 = vcmask 31744   ;;  %s393_s11 = smov [#allocation3]   ;;  %vm306_vm6 = vcmask 122880  }
   0x8   :  { %359 = vset.pattern.permute.xlu1 %v392_v4  ;;  %v31_v7 = vld [vmem:[%s468_s1] sm:$0x3f]  ;;  %v219_v28 = vshrl.u32 %v218_v27, 7  ;;  %s314_s12 = sshll.u32 %s393_s11, 4  ;;  %s315_s12 = int_to_ptr.vmem [resolvable:$true] %s314_s12 }
   0x9   :  { %340 = vmatpush3.xpose.msk.msra.mxu0 %vm38_vm0, %v29_v5  ;;  %v122_v16 = vld [vmem:[%s470_s3] sm:$0xf]  ;;  %s372_s13 = scalar_lea.vmem %s315_s12, 32  ;;  %p373_p1 = scmp.lt.s32.totalorder %s315_s12, %s315_s12 }
   0xa   :  { %126 = vperm.xlu0 %358, %v123_v6   ;;  %v212_v17 = vld [vmem:[#allocation2] sm:$0x1]  ;;  %v220_v29 = vsub.s32 0, %v219_v28 }
   0xb   :  { %215 = vperm.xlu1 %359, %v212_v17   ;;  %v211_v26 = vld [vmem:[%s472_s5] sm:$0x1]  ;;  %s368_s5 = scalar_lea.vmem %s315_s12, 16 }
   0xc   :  { %342 = vmatmul.mubr.msk.f32.vlgmr.msra.gmra.mxu0 %vm38_vm0, %v31_v7  ;;  %p369_p0 = scmp.ne.s32.totalorder %s315_s12, %s368_s5  ;;  %p374_p2 = scmp.lt.s32.totalorder %s372_s13, %s368_s5 }
   0xe   :  { %p375_p3 = por %p374_p2, %p373_p1 }
  0x10   :  { %p376_p4 = pnand %p375_p3, %p369_p0 }
  0x81   :  { %v36_v8 = vpop.permute.xlu0 %35 }
  0x85   :  { %v127_v18 = vpop.permute.xlu0 %126 }
  0x86   :  { %v216_v30 = vpop.permute.xlu1 %215 }
  0x87   :  { %v221_v31 = vrot.slane %v216_v30, %v220_v29 }
  0xcc   :  { %v114_v9 = vpop.f32.mrf.mxu0 }
  0xcd   :  { %v115_v10 = vadd.f32 %v114_v9, %v36_v8 }
  0xce   :  { %v343_v11 = vpop.f32.mrf.mxu0 }
  0xcf   :  { %v118_v12 = vand.u32 2147483647, %v115_v10 }
  0xd1   :  { %v119_v13 = vadd.f32 1.0, %v118_v12 }
  0xd3   :  { %360 = vrcp.f32 %v119_v13 }
  0xe0   :  { %v361_v14 = vpop.eup %360 }
  0xe1   :  { %v121_v15 = vmul.f32 %v361_v14, %v115_v10 }
  0xe3   :  { %345 = vmatpush3.msk.msra.mxu1 %vm133_vm2, %v121_v15 }
  0xe4   :  { %347 = vmatmul.mubr.msk.f32.vlgmr.msra.gmra.mxu1 %vm129_vm3, %v122_v16  ;;  %349 = vmatprep.subr.mxu1 %v390_v2 }
  0xe5   :  { %351 = vmatprep.mubr.msk.f32.mxu1 %vm391_vm1, %v390_v2 }
 0x1a4   :  { %v203_v19 = vpop.f32.mrf.mxu1 }
 0x1a5   :  { %v204_v20 = vadd.f32 %v203_v19, %v127_v18 }
 0x1a6   :  { %v348_v21 = vpop.f32.mrf.mxu1 }
 0x1a7   :  { %v207_v22 = vand.u32 2147483647, %v204_v20 }
 0x1a9   :  { %v208_v23 = vadd.f32 1.0, %v207_v22 }
 0x1ab   :  { %362 = vrcp.f32 %v208_v23 }
 0x1b8   :  { %v363_v24 = vpop.eup %362 }
 0x1b9   :  { %v210_v25 = vmul.f32 %v363_v24, %v204_v20 }
 0x1bb   :  { %350 = vmatpush3.msk.msra.mxu1 %vm226_vm4, %v210_v25 }
 0x1bc   :  { %352 = vmatmul.mubr.msk.f32.vlgmr.msra.gmra.mxu1 %vm222_vm5, %v211_v26 }
 0x27c   :  { %v296_v32 = vpop.f32.mrf.mxu1 }
 0x27d   :  { %v297_v33 = vadd.f32 %v296_v32, %v221_v31 }
 0x27e   :  { %v353_v34 = vpop.f32.mrf.mxu1 }
 0x27f   :  { %v329_v35 = vmul.f32 -1.442695, %v297_v33 }
 0x281   :  { %364 = vpow2.f32 %v329_v35 }
 0x28e   :  { %v365_v36 = vpop.eup %364 }
 0x28f   :  { %v303_v37 = vadd.f32 1.0, %v365_v36 }
 0x291   :  { %366 = vrcp.f32 %v303_v37 }
 0x29e   :  { %v367_v38 = vpop.eup %366 }
 0x29f   :  { %307 = vst.msk [vmem:[#allocation3] sm:$0x1] %vm306_vm6, %v367_v38 }
 0x2a0   :  { %379 = shalt.err (!%p376_p4)
}
 0x2a1   :  { %317 = dma.vmem_to_hbm [thread:$0]  %s315_s12, 16, %s474_s7, [#allocation4]  }
 0x2a2   :  { %388 = dma.done.wait [#allocation4], 16  }
 0x2a3   :  { %389 = vsyncadd [#allocation4], 4294967280 }
 0x2a4   :  { %321 = vsyncpa [#allocation4], 1 }

</bundles_post_ra>
